<compile_context>
chip_gen: v7x
topology: tpu7x:2x2x1
jax: 0.10.0
libtpu: 0.0.40
codegen_flags: <defaults>
</compile_context>

<pallas_src>
import jax
import jax.numpy as jnp
import numpy as np
from jax.experimental import pallas as pl
from jax.experimental.pallas import tpu as pltpu

BN_EPS = 1e-5


def _rnet_kernel(x_ref, w_ref, v_ref, bias_ref, out_ref):
    """Stacked RNet forward: encode [x1;x2] in one pass, dot-comparator, -bias.

    x_ref   : (2B, obs)            stacked inputs (rows 0:B = x1, B:2B = x2)
    w_ref   : (obs+2*hid, hid)     [w0 ; w1 ; w2 zero-padded to hid columns]
    v_ref   : (8, hid)             rows: b0,g0,be0,b1,g1,be1,b2(padded),0
    bias_ref: (1,)   in SMEM       scalar comparator bias
    out_ref : (B, B)               logits
    """
    B = out_ref.shape[0]
    hid = w_ref.shape[1]
    obs = w_ref.shape[0] - 2 * hid

    # Hoist all parameter loads: one vector load per slab.
    w_all = w_ref[...]                       # (obs+2*hid, hid)
    v = v_ref[...]                           # (8, hid)
    w0 = w_all[:obs, :]                      # (obs, hid)
    w1 = w_all[obs:obs + hid, :]             # (hid, hid)
    w2 = w_all[obs + hid:, :]                # (hid, hid)  (cols >= feat are 0)
    b0, g0, be0 = v[0:1, :], v[1:2, :], v[2:3, :]
    b1, g1, be1 = v[3:4, :], v[4:5, :], v[5:6, :]
    b2 = v[6:7, :]                           # zero beyond feat

    def bn_tanh(h, gamma, beta):
        # Per-half BatchNorm1d (training mode): stats over each original
        # encoder call's batch, biased variance, then fused affine + tanh.
        h3 = h.reshape(2, B, hid)                              # (2, B, H)
        mean = jnp.mean(h3, axis=1, keepdims=True)             # (2, 1, H)
        var = jnp.mean(jnp.square(h3 - mean), axis=1, keepdims=True)
        scale = gamma * jax.lax.rsqrt(var + BN_EPS)            # (2, 1, H)
        shift = beta - mean * scale
        return jnp.tanh(h3 * scale + shift).reshape(2 * B, hid)

    x = x_ref[...]                                             # (2B, obs)
    h = jnp.dot(x, w0, preferred_element_type=jnp.float32) + b0
    h = bn_tanh(h, g0, be0)
    h = jnp.dot(h, w1, preferred_element_type=jnp.float32) + b1
    h = bn_tanh(h, g1, be1)
    e = jnp.dot(h, w2, preferred_element_type=jnp.float32) + b2   # (2B, hid)

    e1 = e[:B, :]
    e2 = e[B:, :]
    # comparator 'dot', batchwise=False: e1 @ e2.T (contraction over last dims;
    # zero-padded feature columns contribute nothing).
    logits = jax.lax.dot_general(
        e1, e2,
        dimension_numbers=(((1,), (1,)), ((), ())),
        preferred_element_type=jnp.float32)
    out_ref[...] = logits - bias_ref[0]


def pack_params(params):
    """Pack raw (PyTorch-shaped, pre-transposed) params into kernel slabs."""
    (w0, b0, g0, be0, w1, b1, g1, be1, w2, b2, bias) = params
    obs, hid = w0.shape
    feat = w2.shape[1]
    w2p = jnp.zeros((hid, hid), jnp.float32).at[:, :feat].set(w2)
    b2p = jnp.zeros((1, hid), jnp.float32).at[:, :feat].set(b2)
    w_slab = jnp.concatenate([w0, w1, w2p], axis=0)            # (obs+2*hid, hid)
    v_slab = jnp.concatenate(
        [b0, g0, be0, b1, g1, be1, b2p, jnp.zeros((1, hid), jnp.float32)],
        axis=0)                                                # (8, hid)
    bias_s = bias.reshape(1).astype(jnp.float32)               # (1,) for SMEM
    return w_slab, v_slab, bias_s


def rnet_forward(x1, x2, packed):
    """One pallas_call: 3 VMEM operands + 1 SMEM scalar, no grid (tiny shapes)."""
    w_slab, v_slab, bias = packed
    B = x1.shape[0]
    x = jnp.concatenate([x1, x2], axis=0)                      # (2B, obs)
    vmem = pl.BlockSpec(memory_space=pltpu.MemorySpace.VMEM)
    smem = pl.BlockSpec(memory_space=pltpu.MemorySpace.SMEM)
    return pl.pallas_call(
        _rnet_kernel,
        out_shape=jax.ShapeDtypeStruct((B, B), jnp.float32),
        in_specs=[vmem, vmem, vmem, smem],
        out_specs=vmem,
    )(x, w_slab, v_slab, bias)


rnet_forward_jit = jax.jit(rnet_forward)


def make_params(key, obs_size, hidden, feat):
    """Deterministic synthetic parameters (PyTorch shapes, pre-transposed W)."""
    ks = jax.random.split(key, 6)
    w0 = jax.random.normal(ks[0], (obs_size, hidden), jnp.float32) * 0.1
    b0 = jax.random.normal(ks[1], (1, hidden), jnp.float32) * 0.1
    g0 = jnp.ones((1, hidden), jnp.float32)           # BatchNorm1d gamma init
    be0 = jnp.zeros((1, hidden), jnp.float32)         # BatchNorm1d beta init
    w1 = jax.random.normal(ks[2], (hidden, hidden), jnp.float32) * 0.1
    b1 = jax.random.normal(ks[3], (1, hidden), jnp.float32) * 0.1
    g1 = jnp.ones((1, hidden), jnp.float32)
    be1 = jnp.zeros((1, hidden), jnp.float32)
    w2 = jax.random.normal(ks[4], (hidden, feat), jnp.float32) * 0.1
    b2 = jax.random.normal(ks[5], (1, feat), jnp.float32) * 0.1
    bias = jnp.zeros((1,), jnp.float32)                # nn.Parameter(torch.zeros(1))
    return (w0, b0, g0, be0, w1, b1, g1, be1, w2, b2, bias)


def reference_forward(x1, x2, params):
    """Pure-JAX reference (mirrors PyTorch training-mode BatchNorm1d)."""
    (w0, b0, g0, be0, w1, b1, g1, be1, w2, b2, bias) = params

    def bn_tanh(h, g, be):
        mean = jnp.mean(h, axis=0, keepdims=True)
        var = jnp.mean((h - mean) ** 2, axis=0, keepdims=True)
        return jnp.tanh((h - mean) / jnp.sqrt(var + BN_EPS) * g + be)

    def encode(x):
        h = bn_tanh(x @ w0 + b0, g0, be0)
        h = bn_tanh(h @ w1 + b1, g1, be1)
        return h @ w2 + b2

    e1, e2 = encode(x1), encode(x2)
    return e1 @ e2.T - bias[0]


if __name__ == "__main__":
    B, OBS, HID, FEAT = 8, 16, 32, 16

    key = jax.random.PRNGKey(0)
    k_x1, k_x2, k_p = jax.random.split(key, 3)
    x1 = jax.random.normal(k_x1, (B, OBS), jnp.float32)
    x2 = jax.random.normal(k_x2, (B, OBS), jnp.float32)
    params = make_params(k_p, OBS, HID, FEAT)
    packed = pack_params(params)

    out = rnet_forward_jit(x1, x2, packed)
    out = jax.block_until_ready(out)

    ref = reference_forward(x1, x2, params)
    np.testing.assert_allclose(np.asarray(out), np.asarray(ref),
                               rtol=1e-4, atol=1e-4)

    # TODO(synk): rgb encoder (Conv2d/MaxPool2d), 'net'/'net_sym'/'L2'/
    # 'cosine'/'dot-W' comparators, batchwise mode, PCA and torch save/load
    # utilities are not exercised by this configuration and are left out.
    print("KERNEL_OK")
</pallas_src>

<mosaic_0001>
module attributes {stable_mosaic.version = 11 : i64} {
  func.func @_rnet_kernel(%arg0: memref<16x16xf32, #tpu.memory_space<vmem>>, %arg1: memref<80x32xf32, #tpu.memory_space<vmem>>, %arg2: memref<8x32xf32, #tpu.memory_space<vmem>>, %arg3: memref<1xf32, #tpu.memory_space<smem>>, %arg4: memref<8x8xf32, #tpu.memory_space<vmem>>) attributes {dimension_semantics = [], scalar_prefetch = 0 : i64, scratch_operands = 0 : i64, tpu.core_type = #tpu.core_type<tc>} {
    %c0 = arith.constant 0 : index
    %c0_0 = arith.constant 0 : index
    %0 = vector.load %arg1[%c0, %c0_0] : memref<80x32xf32, #tpu.memory_space<vmem>>, vector<80x32xf32>
    %c0_1 = arith.constant 0 : index
    %c0_2 = arith.constant 0 : index
    %1 = vector.load %arg2[%c0_1, %c0_2] : memref<8x32xf32, #tpu.memory_space<vmem>>, vector<8x32xf32>
    %2 = vector.extract_strided_slice %0 {offsets = [0, 0], sizes = [16, 32], strides = [1, 1]} : vector<80x32xf32> to vector<16x32xf32>
    %3 = vector.extract_strided_slice %0 {offsets = [16, 0], sizes = [32, 32], strides = [1, 1]} : vector<80x32xf32> to vector<32x32xf32>
    %4 = vector.extract_strided_slice %0 {offsets = [48, 0], sizes = [32, 32], strides = [1, 1]} : vector<80x32xf32> to vector<32x32xf32>
    %5 = vector.extract_strided_slice %1 {offsets = [0, 0], sizes = [1, 32], strides = [1, 1]} : vector<8x32xf32> to vector<1x32xf32>
    %6 = vector.extract_strided_slice %1 {offsets = [1, 0], sizes = [1, 32], strides = [1, 1]} : vector<8x32xf32> to vector<1x32xf32>
    %7 = vector.extract_strided_slice %1 {offsets = [2, 0], sizes = [1, 32], strides = [1, 1]} : vector<8x32xf32> to vector<1x32xf32>
    %8 = vector.extract_strided_slice %1 {offsets = [3, 0], sizes = [1, 32], strides = [1, 1]} : vector<8x32xf32> to vector<1x32xf32>
    %9 = vector.extract_strided_slice %1 {offsets = [4, 0], sizes = [1, 32], strides = [1, 1]} : vector<8x32xf32> to vector<1x32xf32>
    %10 = vector.extract_strided_slice %1 {offsets = [5, 0], sizes = [1, 32], strides = [1, 1]} : vector<8x32xf32> to vector<1x32xf32>
    %11 = vector.extract_strided_slice %1 {offsets = [6, 0], sizes = [1, 32], strides = [1, 1]} : vector<8x32xf32> to vector<1x32xf32>
    %c0_3 = arith.constant 0 : index
    %c0_4 = arith.constant 0 : index
    %12 = vector.load %arg0[%c0_3, %c0_4] : memref<16x16xf32, #tpu.memory_space<vmem>>, vector<16x16xf32>
    %cst = arith.constant dense<0.000000e+00> : vector<16x32xf32>
    %13 = tpu.matmul %12, %2, %cst {dimension_numbers = #tpu.dot_dimension_numbers<[1], [0], [0], [1], [0, 0, 1, 1], [], []>} : vector<16x16xf32>, vector<16x32xf32>, vector<16x32xf32> -> vector<16x32xf32>
    %14 = vector.broadcast %5 : vector<1x32xf32> to vector<16x32xf32>
    %15 = arith.addf %13, %14 : vector<16x32xf32>
    %16 = vector.shape_cast %15 : vector<16x32xf32> to vector<2x8x32xf32>
    %cst_5 = arith.constant dense<0.000000e+00> : vector<2x32xf32>
    %17 = vector.multi_reduction <add>, %16, %cst_5 [1] : vector<2x8x32xf32> to vector<2x32xf32>
    %18 = vector.shape_cast %17 : vector<2x32xf32> to vector<2x1x32xf32>
    %cst_6 = arith.constant 8.000000e+00 : f32
    %19 = vector.broadcast %cst_6 : f32 to vector<2x1x32xf32>
    %20 = arith.divf %18, %19 : vector<2x1x32xf32>
    %21 = vector.broadcast %20 : vector<2x1x32xf32> to vector<2x8x32xf32>
    %22 = arith.subf %16, %21 : vector<2x8x32xf32>
    %23 = arith.mulf %22, %22 : vector<2x8x32xf32>
    %cst_7 = arith.constant dense<0.000000e+00> : vector<2x32xf32>
    %24 = vector.multi_reduction <add>, %23, %cst_7 [1] : vector<2x8x32xf32> to vector<2x32xf32>
    %25 = vector.shape_cast %24 : vector<2x32xf32> to vector<2x1x32xf32>
    %cst_8 = arith.constant 8.000000e+00 : f32
    %26 = vector.broadcast %cst_8 : f32 to vector<2x1x32xf32>
    %27 = arith.divf %25, %26 : vector<2x1x32xf32>
    %cst_9 = arith.constant 9.99999974E-6 : f32
    %28 = vector.broadcast %cst_9 : f32 to vector<2x1x32xf32>
    %29 = arith.addf %27, %28 : vector<2x1x32xf32>
    %30 = math.rsqrt %29 : vector<2x1x32xf32>
    %31 = vector.shape_cast %6 : vector<1x32xf32> to vector<1x1x32xf32>
    %32 = vector.broadcast %31 : vector<1x1x32xf32> to vector<2x1x32xf32>
    %33 = arith.mulf %32, %30 : vector<2x1x32xf32>
    %34 = arith.mulf %20, %33 : vector<2x1x32xf32>
    %35 = vector.shape_cast %7 : vector<1x32xf32> to vector<1x1x32xf32>
    %36 = vector.broadcast %35 : vector<1x1x32xf32> to vector<2x1x32xf32>
    %37 = arith.subf %36, %34 : vector<2x1x32xf32>
    %38 = vector.broadcast %33 : vector<2x1x32xf32> to vector<2x8x32xf32>
    %39 = arith.mulf %16, %38 : vector<2x8x32xf32>
    %40 = vector.broadcast %37 : vector<2x1x32xf32> to vector<2x8x32xf32>
    %41 = arith.addf %39, %40 : vector<2x8x32xf32>
    %42 = math.tanh %41 : vector<2x8x32xf32>
    %43 = vector.shape_cast %42 : vector<2x8x32xf32> to vector<16x32xf32>
    %cst_10 = arith.constant dense<0.000000e+00> : vector<16x32xf32>
    %44 = tpu.matmul %43, %3, %cst_10 {dimension_numbers = #tpu.dot_dimension_numbers<[1], [0], [0], [1], [0, 0, 1, 1], [], []>} : vector<16x32xf32>, vector<32x32xf32>, vector<16x32xf32> -> vector<16x32xf32>
    %45 = vector.broadcast %8 : vector<1x32xf32> to vector<16x32xf32>
    %46 = arith.addf %44, %45 : vector<16x32xf32>
    %47 = vector.shape_cast %46 : vector<16x32xf32> to vector<2x8x32xf32>
    %cst_11 = arith.constant dense<0.000000e+00> : vector<2x32xf32>
    %48 = vector.multi_reduction <add>, %47, %cst_11 [1] : vector<2x8x32xf32> to vector<2x32xf32>
    %49 = vector.shape_cast %48 : vector<2x32xf32> to vector<2x1x32xf32>
    %cst_12 = arith.constant 8.000000e+00 : f32
    %50 = vector.broadcast %cst_12 : f32 to vector<2x1x32xf32>
    %51 = arith.divf %49, %50 : vector<2x1x32xf32>
    %52 = vector.broadcast %51 : vector<2x1x32xf32> to vector<2x8x32xf32>
    %53 = arith.subf %47, %52 : vector<2x8x32xf32>
    %54 = arith.mulf %53, %53 : vector<2x8x32xf32>
    %cst_13 = arith.constant dense<0.000000e+00> : vector<2x32xf32>
    %55 = vector.multi_reduction <add>, %54, %cst_13 [1] : vector<2x8x32xf32> to vector<2x32xf32>
    %56 = vector.shape_cast %55 : vector<2x32xf32> to vector<2x1x32xf32>
    %cst_14 = arith.constant 8.000000e+00 : f32
    %57 = vector.broadcast %cst_14 : f32 to vector<2x1x32xf32>
    %58 = arith.divf %56, %57 : vector<2x1x32xf32>
    %cst_15 = arith.constant 9.99999974E-6 : f32
    %59 = vector.broadcast %cst_15 : f32 to vector<2x1x32xf32>
    %60 = arith.addf %58, %59 : vector<2x1x32xf32>
    %61 = math.rsqrt %60 : vector<2x1x32xf32>
    %62 = vector.shape_cast %9 : vector<1x32xf32> to vector<1x1x32xf32>
    %63 = vector.broadcast %62 : vector<1x1x32xf32> to vector<2x1x32xf32>
    %64 = arith.mulf %63, %61 : vector<2x1x32xf32>
    %65 = arith.mulf %51, %64 : vector<2x1x32xf32>
    %66 = vector.shape_cast %10 : vector<1x32xf32> to vector<1x1x32xf32>
    %67 = vector.broadcast %66 : vector<1x1x32xf32> to vector<2x1x32xf32>
    %68 = arith.subf %67, %65 : vector<2x1x32xf32>
    %69 = vector.broadcast %64 : vector<2x1x32xf32> to vector<2x8x32xf32>
    %70 = arith.mulf %47, %69 : vector<2x8x32xf32>
    %71 = vector.broadcast %68 : vector<2x1x32xf32> to vector<2x8x32xf32>
    %72 = arith.addf %70, %71 : vector<2x8x32xf32>
    %73 = math.tanh %72 : vector<2x8x32xf32>
    %74 = vector.shape_cast %73 : vector<2x8x32xf32> to vector<16x32xf32>
    %cst_16 = arith.constant dense<0.000000e+00> : vector<16x32xf32>
    %75 = tpu.matmul %74, %4, %cst_16 {dimension_numbers = #tpu.dot_dimension_numbers<[1], [0], [0], [1], [0, 0, 1, 1], [], []>} : vector<16x32xf32>, vector<32x32xf32>, vector<16x32xf32> -> vector<16x32xf32>
    %76 = vector.broadcast %11 : vector<1x32xf32> to vector<16x32xf32>
    %77 = arith.addf %75, %76 : vector<16x32xf32>
    %78 = vector.extract_strided_slice %77 {offsets = [0, 0], sizes = [8, 32], strides = [1, 1]} : vector<16x32xf32> to vector<8x32xf32>
    %79 = vector.extract_strided_slice %77 {offsets = [8, 0], sizes = [8, 32], strides = [1, 1]} : vector<16x32xf32> to vector<8x32xf32>
    %cst_17 = arith.constant dense<0.000000e+00> : vector<8x8xf32>
    %80 = tpu.matmul %78, %79, %cst_17 {dimension_numbers = #tpu.dot_dimension_numbers<[1], [1], [0], [0], [0, 0, 1, 0], [], []>} : vector<8x32xf32>, vector<8x32xf32>, vector<8x8xf32> -> vector<8x8xf32>
    %c0_18 = arith.constant 0 : index
    %81 = memref.load %arg3[%c0_18] : memref<1xf32, #tpu.memory_space<smem>>
    %82 = vector.broadcast %81 : f32 to vector<8x8xf32>
    %83 = arith.subf %80, %82 : vector<8x8xf32>
    %c0_19 = arith.constant 0 : index
    %c0_20 = arith.constant 0 : index
    %84 = vector.load %arg4[%c0_19, %c0_20] : memref<8x8xf32, #tpu.memory_space<vmem>>, vector<8x8xf32>
    tpu.vector_store %arg4[%c0_19, %c0_20], %83 {strides = array<i32>} : memref<8x8xf32, #tpu.memory_space<vmem>>, vector<8x8xf32>,
    return
  }
}

</mosaic_0001>

<bundles_post_ra>
// kernel: rnet_forward.1
= control target key start
LH: loop header
LB: loop body
LE: loop exit
PB: predicated region body
PF: predicated region fallthrough
CT: control target
= control target key end

     0   :  { %vm36_vm0 = vcmask 130048   ;;  %s774_s0 = inlined_call_operand.vmem [shape: f32[16,16], index: 0, kind: input, shape index: {}]   ;;  %s775_s1 = inlined_call_operand.vmem [shape: f32[80,32], index: 1, kind: input, shape index: {}]   ;;  %s776_s2 = inlined_call_operand.vmem [shape: f32[8,32], index: 2, kind: input, shape index: {}]   ;;  %s777_s3 = inlined_call_operand.<no memory space> [shape: f32[1], index: 3, kind: input, shape index: {}]   ;;  %s778_s4 = inlined_call_operand.hbm [shape: f32[8,8], index: 4, kind: output, shape index: {}]  }
   0x1   :  { %v19_v0 = vld [vmem:[%s775_s1] sm:$0xff]  ;;  %v20_v1 = vld [vmem:[%s775_s1 + $0x8] sm:$0xff] }
   0x2   :  { %v30_v2 = vld [vmem:[%s774_s0] sm:$0xff]  ;;  %v593_v3 = vpack.c.bf16 %v20_v1, %v19_v0 }
   0x3   :  { %563 = vmatprep.mubr.msk.f32.mxu0 %vm36_vm0, %v30_v2 }
   0x4   :  { %10 = vsyncpa [#allocation4], 0  ;;  %594 = vmatprep.subr.bf16.mxu0 %v593_v3  ;;  %v31_v4 = vld [vmem:[%s774_s0 + $0x8] sm:$0xff]  ;;  %v21_v5 = vld [vmem:[%s775_s1 + $0x10] sm:$0xff]  ;;  %v32_v11 = vlaneseq  ;;  %vm118_vm1 = vcmask 261120   ;;  %vm657_vm2 = vmmov 0  }
   0x5   :  { %596 = vmatpush3.bf16.msra.mxu0 %v593_v3  ;;  %v22_v6 = vld [vmem:[%s775_s1 + $0x18] sm:$0xff]  ;;  %v23_v7 = vld [vmem:[%s775_s1 + $0x20] sm:$0xff]  ;;  %v24_v9 = vld [vmem:[%s775_s1 + $0x28] sm:$0xff]  ;;  %s658_s14 = smov [#allocation3]   ;;  %vm517_vm3 = vcmask 64512  }
   0x6   :  { %v597_v8 = vpack.c.bf16 %v22_v6, %v21_v5  ;;  %v601_v10 = vpack.c.bf16 %v24_v9, %v23_v7  ;;  %v708_v12 = vshrl.u32 %v32_v11, 7  ;;  %v714_v14 = vld [vmem:[%s776_s2] sm:$0xff]  ;;  %s525_s15 = sshll.u32 %s658_s14, 4  ;;  %s526_s15 = int_to_ptr.vmem [resolvable:$true] %s525_s15 }
   0x7   :  { %s632_s16 = scalar_lea.vmem %s526_s15, 128  ;;  %p637_p1 = scmp.lt.s32.totalorder %s526_s15, %s526_s15 }
   0x8   :  { %564 = vmatmul.mubr.msk.f32.vlgmr.msra.gmra.mrb[0].mxu0 %vm36_vm0, %v31_v4  ;;  %598 = vmatprep.subr.bf16.mxu1 %v597_v8  ;;  %v34_v13 = vsub.s32 0, %v708_v12  ;;  %v174_v61 = vsub.s32 1, %v708_v12  ;;  %v184_v3 = vsub.s32 2, %v708_v12  ;;  %p633_p0 = scmp.ne.s32.totalorder %s526_s15, %s632_s16  ;;  %p638_p2 = scmp.lt.s32.totalorder %s632_s16, %s632_s16 }
   0x9   :  { %600 = vmatpush3.bf16.msra.mxu1 %v597_v8 }
   0xa   :  { %602 = vmatprep.subr.bf16.mxu1 %v601_v10  ;;  %v35_v15 = vrot.slane %v714_v14, %v34_v13  ;;  %p639_p3 = por %p638_p2, %p637_p1 }
   0xc   :  { %p640_p4 = pnand %p639_p3, %p633_p0 }
   0xd   :  { %604 = vmatpush3.bf16.msra.mxu1 %v601_v10 }
  0xdb   :  { %v565_v16 = vpop.f32.mrb[0].mxu0 }
  0xdc   :  { %v115_v17 = vadd.f32 %v565_v16, %v35_v15  ;;  %v109_v18 = vpop.f32.mrb[1].mxu0 }
  0xdd   :  { %v110_v19 = vadd.f32 %v109_v18, %v35_v15 }
  0xde   :  { %v126_v20 = vsel %vm118_vm1, %v115_v17, 0.0 }
  0xdf   :  { %v127_v21 = vrot.slane %v126_v20, 4  ;;  %v119_v22 = vsel %vm118_vm1, %v110_v19, 0.0 }
  0xe0   :  { %v120_v23 = vrot.slane %v119_v22, 4 }
  0xe1   :  { %v128_v24 = vadd.f32 %v127_v21, %v126_v20  ;;  %v25_v20 = vld [vmem:[%s775_s1 + $0x30] sm:$0xff] }
  0xe2   :  { %v121_v25 = vadd.f32 %v120_v23, %v119_v22  ;;  %v28_v22 = vld [vmem:[%s775_s1 + $0x48] sm:$0xff] }
  0xe3   :  { %v129_v26 = vrot.slane %v128_v24, 2 }
  0xe4   :  { %v122_v27 = vrot.slane %v121_v25, 2 }
  0xe5   :  { %v130_v28 = vadd.f32 %v129_v26, %v128_v24  ;;  %v196_v24 = vsub.s32 3, %v708_v12 }
  0xe6   :  { %v123_v29 = vadd.f32 %v122_v27, %v121_v25 }
  0xe7   :  { %v131_v30 = vrot.slane %v130_v28, 1  ;;  %v197_v25 = vrot.slane %v714_v14, %v196_v24 }
  0xe8   :  { %v124_v31 = vrot.slane %v123_v29, 1 }
  0xe9   :  { %v132_v32 = vadd.f32 %v131_v30, %v130_v28 }
  0xea   :  { %v125_v33 = vadd.f32 %v124_v31, %v123_v29 }
  0xeb   :  { %v135_v34 = vmul.f32 0.125, %v132_v32 }
  0xec   :  { %v134_v35 = vmul.f32 0.125, %v125_v33 }
  0xed   :  { %v137_v36 = vsub.f32 %v115_v17, %v135_v34 }
  0xee   :  { %v136_v37 = vsub.f32 %v110_v19, %v134_v35 }
  0xef   :  { %v139_v38 = vmul.f32 %v137_v36, %v137_v36 }
  0xf0   :  { %v138_v39 = vmul.f32 %v136_v37, %v136_v37 }
  0xf1   :  { %v147_v40 = vsel %vm118_vm1, %v139_v38, 0.0 }
  0xf2   :  { %v148_v41 = vrot.slane %v147_v40, 4  ;;  %v140_v42 = vsel %vm118_vm1, %v138_v39, 0.0 }
  0xf3   :  { %v141_v43 = vrot.slane %v140_v42, 4 }
  0xf4   :  { %v149_v44 = vadd.f32 %v148_v41, %v147_v40 }
  0xf5   :  { %v142_v45 = vadd.f32 %v141_v43, %v140_v42 }
  0xf6   :  { %v150_v46 = vrot.slane %v149_v44, 2 }
  0xf7   :  { %v143_v47 = vrot.slane %v142_v45, 2 }
  0xf8   :  { %v151_v48 = vadd.f32 %v150_v46, %v149_v44 }
  0xf9   :  { %v144_v49 = vadd.f32 %v143_v47, %v142_v45 }
  0xfa   :  { %v152_v50 = vrot.slane %v151_v48, 1 }
  0xfb   :  { %v145_v51 = vrot.slane %v144_v49, 1 }
  0xfc   :  { %v153_v52 = vadd.f32 %v152_v50, %v151_v48 }
  0xfd   :  { %v146_v53 = vadd.f32 %v145_v51, %v144_v49 }
  0xfe   :  { %v155_v54 = vmul.f32 0.125, %v153_v52 }
  0xff   :  { %v154_v55 = vmul.f32 0.125, %v146_v53 }
 0x100   :  { %v157_v56 = vadd.f32 1e-05, %v155_v54 }
 0x101   :  { %v156_v57 = vadd.f32 1e-05, %v154_v55 }
 0x102   :  { %616 = vrsqrt.f32 %v157_v56 }
 0x103   :  { %618 = vrsqrt.f32 %v156_v57 }
 0x10c   :  { %v617_v58 = vpop.eup %616 }
 0x10d   :  { %v619_v59 = vpop.eup %618  ;;  %v161_v60 = vmul.f32 %v617_v58, %v714_v14 }
 0x10e   :  { %v160_v62 = vmul.f32 %v619_v59, %v714_v14 }
 0x10f   :  { %v163_v63 = vmul.f32 %v161_v60, %v135_v34  ;;  %v179_v2 = vrot.slane %v161_v60, %v174_v61 }
 0x110   :  { %v162_v0 = vmul.f32 %v160_v62, %v134_v35  ;;  %v175_v5 = vrot.slane %v160_v62, %v174_v61 }
 0x111   :  { %v167_v1 = vrot.slane %v163_v63, 7  ;;  %v181_v8 = vmul.f32 %v179_v2, %v115_v17  ;;  %v26_v17 = vld [vmem:[%s775_s1 + $0x38] sm:$0xff] }
 0x112   :  { %v166_v4 = vrot.slane %v162_v0, 7  ;;  %v180_v10 = vmul.f32 %v175_v5, %v110_v19  ;;  %v27_v19 = vld [vmem:[%s775_s1 + $0x40] sm:$0xff]  ;;  %v605_v21 = vpack.c.bf16 %v26_v17, %v25_v20 }
 0x113   :  { %v171_v6 = vsub.f32 %v714_v14, %v167_v1  ;;  %v609_v23 = vpack.c.bf16 %v28_v22, %v27_v19 }
 0x114   :  { %v170_v7 = vsub.f32 %v714_v14, %v166_v4  ;;  %606 = vmatprep.subr.bf16.mxu0 %v605_v21 }
 0x115   :  { %v189_v9 = vrot.slane %v171_v6, %v184_v3  ;;  %608 = vmatpush3.bf16.msra.mxu0 %v605_v21 }
 0x116   :  { %v185_v11 = vrot.slane %v170_v7, %v184_v3  ;;  %610 = vmatprep.subr.bf16.mxu0 %v609_v23  ;;  %v333_v7 = vsub.s32 4, %v708_v12 }
 0x117   :  { %v191_v13 = vadd.f32 %v189_v9, %v181_v8 }
 0x118   :  { %v190_v15 = vadd.f32 %v185_v11, %v180_v10 }
 0x119   :  { %612 = vmatpush3.bf16.msra.mxu0 %v609_v23 }
 0x11a   :  { %620 = vtanh.f32 %v190_v15  ;;  %v343_v15 = vsub.s32 5, %v708_v12 }
 0x11b   :  { %622 = vtanh.f32 %v191_v13 }
 0x124   :  { %v621_v16 = vpop.eup %620 }
 0x125   :  { %v623_v18 = vpop.eup %622  ;;  %574 = vmatprep.mubr.msk.f32.mxu1 %vm118_vm1, %v621_v16 }
 0x126   :  { %575 = vmatmul.mubr.msk.f32.vlgmr.msra.gmra.mrb[0].mxu1 %vm118_vm1, %v623_v18 }
 0x1f9   :  { %v576_v26 = vpop.f32.mrb[0].mxu1 }
 0x1fa   :  { %v276_v27 = vadd.f32 %v576_v26, %v197_v25  ;;  %v270_v28 = vpop.f32.mrb[1].mxu1 }
 0x1fb   :  { %v271_v29 = vadd.f32 %v270_v28, %v197_v25 }
 0x1fc   :  { %v286_v30 = vsel %vm118_vm1, %v276_v27, 0.0 }
 0x1fd   :  { %v287_v31 = vrot.slane %v286_v30, 4  ;;  %v279_v32 = vsel %vm118_vm1, %v271_v29, 0.0 }
 0x1fe   :  { %v280_v33 = vrot.slane %v279_v32, 4 }
 0x1ff   :  { %v288_v34 = vadd.f32 %v287_v31, %v286_v30  ;;  %v656_v30 = vmov 0.0   ;;  %v355_v31 = vsub.s32 6, %v708_v12 }
 0x200   :  { %v281_v35 = vadd.f32 %v280_v33, %v279_v32  ;;  %588 = vmatprep.subr.mxu1 %v656_v30  ;;  %590 = vmatprep.mubr.msk.f32.mxu1 %vm657_vm2, %v656_v30 }
 0x201   :  { %v289_v36 = vrot.slane %v288_v34, 2 }
 0x202   :  { %v282_v37 = vrot.slane %v281_v35, 2 }
 0x203   :  { %v290_v38 = vadd.f32 %v289_v36, %v288_v34 }
 0x204   :  { %v283_v39 = vadd.f32 %v282_v37, %v281_v35  ;;  %v515_v35 = vstv %s777_s3 }
 0x205   :  { %v291_v40 = vrot.slane %v290_v38, 1 }
 0x206   :  { %v284_v41 = vrot.slane %v283_v39, 1 }
 0x207   :  { %v292_v42 = vadd.f32 %v291_v40, %v290_v38 }
 0x208   :  { %v285_v43 = vadd.f32 %v284_v41, %v283_v39 }
 0x209   :  { %v294_v44 = vmul.f32 0.125, %v292_v42 }
 0x20a   :  { %v293_v45 = vmul.f32 0.125, %v285_v43 }
 0x20b   :  { %v296_v46 = vsub.f32 %v276_v27, %v294_v44 }
 0x20c   :  { %v295_v47 = vsub.f32 %v271_v29, %v293_v45 }
 0x20d   :  { %v298_v48 = vmul.f32 %v296_v46, %v296_v46 }
 0x20e   :  { %v297_v49 = vmul.f32 %v295_v47, %v295_v47 }
 0x20f   :  { %v306_v50 = vsel %vm118_vm1, %v298_v48, 0.0 }
 0x210   :  { %v307_v51 = vrot.slane %v306_v50, 4  ;;  %v299_v52 = vsel %vm118_vm1, %v297_v49, 0.0 }
 0x211   :  { %v300_v53 = vrot.slane %v299_v52, 4 }
 0x212   :  { %v308_v54 = vadd.f32 %v307_v51, %v306_v50 }
 0x213   :  { %v301_v55 = vadd.f32 %v300_v53, %v299_v52 }
 0x214   :  { %v309_v56 = vrot.slane %v308_v54, 2 }
 0x215   :  { %v302_v57 = vrot.slane %v301_v55, 2 }
 0x216   :  { %v310_v58 = vadd.f32 %v309_v56, %v308_v54 }
 0x217   :  { %v303_v59 = vadd.f32 %v302_v57, %v301_v55 }
 0x218   :  { %v311_v60 = vrot.slane %v310_v58, 1 }
 0x219   :  { %v304_v61 = vrot.slane %v303_v59, 1 }
 0x21a   :  { %v312_v62 = vadd.f32 %v311_v60, %v310_v58 }
 0x21b   :  { %v305_v63 = vadd.f32 %v304_v61, %v303_v59 }
 0x21c   :  { %v314_v0 = vmul.f32 0.125, %v312_v62 }
 0x21d   :  { %v313_v1 = vmul.f32 0.125, %v305_v63 }
 0x21e   :  { %v316_v2 = vadd.f32 1e-05, %v314_v0 }
 0x21f   :  { %v315_v3 = vadd.f32 1e-05, %v313_v1 }
 0x220   :  { %624 = vrsqrt.f32 %v316_v2 }
 0x221   :  { %626 = vrsqrt.f32 %v315_v3 }
 0x22a   :  { %v625_v4 = vpop.eup %624 }
 0x22b   :  { %v627_v5 = vpop.eup %626  ;;  %v320_v6 = vmul.f32 %v625_v4, %v714_v14 }
 0x22c   :  { %v319_v8 = vmul.f32 %v627_v5, %v714_v14 }
 0x22d   :  { %v322_v9 = vmul.f32 %v320_v6, %v294_v44  ;;  %v338_v13 = vrot.slane %v320_v6, %v333_v7 }
 0x22e   :  { %v321_v10 = vmul.f32 %v319_v8, %v293_v45  ;;  %v334_v18 = vrot.slane %v319_v8, %v333_v7 }
 0x22f   :  { %v326_v11 = vrot.slane %v322_v9, 7  ;;  %v340_v19 = vmul.f32 %v338_v13, %v276_v27  ;;  %v356_v27 = vrot.slane %v714_v14, %v355_v31 }
 0x230   :  { %v325_v16 = vrot.slane %v321_v10, 7  ;;  %v339_v22 = vmul.f32 %v334_v18, %v271_v29 }
 0x231   :  { %v330_v20 = vsub.f32 %v714_v14, %v326_v11 }
 0x232   :  { %v329_v17 = vsub.f32 %v714_v14, %v325_v16 }
 0x233   :  { %v348_v21 = vrot.slane %v330_v20, %v343_v15 }
 0x234   :  { %v344_v23 = vrot.slane %v329_v17, %v343_v15 }
 0x235   :  { %v350_v24 = vadd.f32 %v348_v21, %v340_v19 }
 0x236   :  { %v349_v25 = vadd.f32 %v344_v23, %v339_v22 }
 0x238   :  { %628 = vtanh.f32 %v349_v25 }
 0x239   :  { %630 = vtanh.f32 %v350_v24 }
 0x242   :  { %v629_v26 = vpop.eup %628 }
 0x243   :  { %v631_v28 = vpop.eup %630  ;;  %585 = vmatprep.mubr.msk.f32.mxu0 %vm118_vm1, %v629_v26 }
 0x244   :  { %586 = vmatmul.mubr.msk.f32.vlgmr.msra.gmra.mrb[2].mxu0 %vm118_vm1, %v631_v28 }
 0x317   :  { %v587_v29 = vpop.f32.mrb[2].mxu0 }
 0x318   :  { %v435_v32 = vadd.f32 %v587_v29, %v356_v27  ;;  %v429_v33 = vpop.f32.mrb[3].mxu0 }
 0x319   :  { %v430_v34 = vadd.f32 %v429_v33, %v356_v27 }
 0x31a   :  { %589 = vmatpush3.xpose.msk.msra.mxu1 %vm118_vm1, %v435_v32 }
 0x31d   :  { %591 = vmatmul.mubr.msk.f32.vlgmr.msra.gmra.mrb[2].mxu1 %vm118_vm1, %v430_v34 }
 0x3f0   :  { %v510_v36 = vpop.f32.mrb[2].mxu1 }
 0x3f1   :  { %v516_v37 = vsub.f32 %v510_v36, %v515_v35  ;;  %v592_v12 = vpop.f32.mrb[3].mxu1 }
 0x3f3   :  { %518 = vst.msk [vmem:[#allocation3] sm:$0xff] %vm517_vm3, %v516_v37 }
 0x3f4   :  { %643 = shalt.err (!%p640_p4)
}
 0x3f5   :  { %s644_s19 = scalar_lea.hbm %s778_s4, 128 }
 0x3f6   :  { %p645_p5 = scmp.ne.s32.totalorder %s778_s4, %s644_s19  ;;  %p648_p6 = scmp.lt.u32.totalorder %s644_s19, %s778_s4 }
 0x3f8   :  { %p650_p7 = pnand %p648_p6, %p645_p5 }
 0x3fa   :  { %653 = shalt.err (!%p650_p7)
}
 0x3fb   :  { %528 = dma.vmem_to_hbm [thread:$0]  %s526_s15, 128, %s778_s4, [#allocation4]  }
 0x3fc   :  { %654 = dma.done.wait [#allocation4], 128  }
 0x3fd   :  { %655 = vsyncadd [#allocation4], 4294967168 }
 0x3fe   :  { %532 = vsyncpa [#allocation4], 1 }

</bundles_post_ra>
